<compile_context>
chip_gen: v5e
topology: v5e:2x2
jax: 0.10.0
libtpu: 0.0.40
codegen_flags: <defaults>
</compile_context>

<pallas_src>
import math

import jax
import jax.numpy as jnp
from jax import lax
from jax.experimental import pallas as pl
from jax.experimental.pallas import tpu as pltpu

_LANE = 512          # last block dim: large multiple of 128 -> unmasked vst
_MAX_TILE_ROWS = 512 # ~1 MiB f32 tiles; 3 arrays x 2 buffers ~= 6 MiB VMEM
_ROW_ALIGN = 16      # sublane alignment valid for f32 (8) and bf16 (16)


def _round_up(x, m):
    return (x + m - 1) // m * m


def _gaussian_noise_kernel(std_ref, bits_ref, x_ref, o_ref):
    # std_ref: (1,) float32 in SMEM.  bits_ref: int32 tile of random bits.
    std = std_ref[0]
    bits = bits_ref[...]
    # Low 24 bits -> uniform in the open interval (0, 1), exact in float32.
    m = bits & 0x00FFFFFF
    u = (m.astype(jnp.float32) + 0.5) * jnp.float32(2.0 ** -24)
    # Inverse normal CDF: z ~ N(0, 1).  lax.erf_inv lowers to a polynomial on
    # TPU (no trig / no rejection needed), and works in interpret mode too.
    z = jnp.float32(math.sqrt(2.0)) * lax.erf_inv(2.0 * u - 1.0)
    out = x_ref[...].astype(jnp.float32) + z * std
    o_ref[...] = out.astype(o_ref.dtype)


def gaussian_noise(image, mask, std=None, *, min_std=0.0, max_std=0.1,
                   seed=0, key=None):
    """Pallas equivalent of GaussianNoise.forward.

    image: (N, C, H, W) float array (NCHW, matching PyTorch).
    mask:  passed through unchanged.
    std:   scalar; if None, sampled uniformly from [min_std, max_std]
           (mirrors get_random_std, done in plain JAX glue).
    """
    if key is None:
        key = jax.random.PRNGKey(seed)
    k_std, k_noise = jax.random.split(key)

    if std is None:
        std = jax.random.uniform(k_std, (), dtype=jnp.float32) * (max_std - min_std) + min_std
    # Keep std as a 32-bit scalar for SMEM regardless of image dtype.
    std_arr = jnp.asarray(std, dtype=jnp.float32).reshape(1)

    orig_shape = image.shape
    total = int(image.size)
    itemsize = jnp.dtype(image.dtype).itemsize

    # Lane-dense slab: flatten, pad so the (tile_rows, _LANE) grid divides it.
    rows = _round_up(pl.cdiv(total, _LANE), _ROW_ALIGN)
    tile_rows = min(_MAX_TILE_ROWS, rows)
    rows = _round_up(rows, tile_rows)
    padded = rows * _LANE

    flat = image.reshape(-1)
    if padded != total:
        flat = jnp.pad(flat, (0, padded - total))
    x2d = flat.reshape(rows, _LANE)

    # One u32 of key-driven randomness per element (bit-preserving int32 view
    # so the kernel only touches signed integer ops).
    bits = jax.random.bits(k_noise, (rows, _LANE), dtype=jnp.uint32)
    bits = lax.bitcast_convert_type(bits, jnp.int32)

    grid = (rows // tile_rows,)
    out2d = pl.pallas_call(
        _gaussian_noise_kernel,
        out_shape=jax.ShapeDtypeStruct((rows, _LANE), image.dtype),
        grid=grid,
        in_specs=[
            pl.BlockSpec(memory_space=pltpu.MemorySpace.SMEM),     # std (f32)
            pl.BlockSpec((tile_rows, _LANE), lambda i: (i, 0)),    # bits tile
            pl.BlockSpec((tile_rows, _LANE), lambda i: (i, 0)),    # image tile
        ],
        out_specs=pl.BlockSpec((tile_rows, _LANE), lambda i: (i, 0)),
        # Update the image slab in place (elementwise -> safe to alias).
        input_output_aliases={2: 0},
        compiler_params=pltpu.CompilerParams(
            dimension_semantics=("parallel",)),
        cost_estimate=pl.CostEstimate(
            flops=8 * padded,
            transcendentals=2 * padded,
            bytes_accessed=2 * padded * itemsize + 4 * padded),
    )(std_arr, bits, x2d)

    out = out2d.reshape(-1)[:total].reshape(orig_shape)
    return out, mask


if __name__ == "__main__":
    key = jax.random.PRNGKey(0)
    k_img, k_mask, k_run1, k_run2 = jax.random.split(key, 4)

    # Small shapes consistent with an image/mask forward pass.
    image = jax.random.normal(k_img, (2, 4, 16, 16), dtype=jnp.float32)
    mask = (jax.random.uniform(k_mask, (2, 1, 16, 16)) > 0.5).astype(jnp.float32)

    # Fixed std path.
    out_img, out_mask = gaussian_noise(image, mask, std=0.05, key=k_run1)
    out_img = jax.block_until_ready(out_img)
    out_mask = jax.block_until_ready(out_mask)

    # Random-std path (min_std/max_std specified, std=None like the module).
    out_img2, _ = gaussian_noise(image, mask, std=None,
                                 min_std=0.01, max_std=0.2, key=k_run2)
    out_img2 = jax.block_until_ready(out_img2)

    # Sanity checks: shape/dtype preserved, mask untouched, noise actually added.
    assert out_img.shape == image.shape and out_img.dtype == image.dtype
    assert out_img2.shape == image.shape
    assert out_mask.shape == mask.shape
    assert bool(jnp.all(out_mask == mask))
    assert float(jnp.max(jnp.abs(out_img - image))) > 0.0
    assert bool(jnp.all(jnp.isfinite(out_img)))

    # Noise statistics roughly match N(0, std^2) for std = 0.05.
    noise = out_img - image
    assert abs(float(jnp.std(noise)) - 0.05) < 0.02
    assert abs(float(jnp.mean(noise))) < 0.01

    print("KERNEL_OK")
</pallas_src>

<mosaic_0001>
module attributes {stable_mosaic.version = 11 : i64} {
  func.func @_gaussian_noise_kernel(%arg0: i32, %arg1: memref<1xf32, #tpu.memory_space<smem>>, %arg2: memref<16x512xi32, #tpu.memory_space<vmem>>, %arg3: memref<16x512xf32, #tpu.memory_space<vmem>>, %arg4: memref<16x512xf32, #tpu.memory_space<vmem>>) attributes {dimension_semantics = [#tpu.dimension_semantics<parallel>], iteration_bounds = array<i64: 1>, scalar_prefetch = 0 : i64, scratch_operands = 0 : i64, tpu.core_type = #tpu.core_type<tc>, window_params = [{transform_indices = @transform_0, window_bounds = array<i64: 1>}, {transform_indices = @transform_1, window_bounds = array<i64: 16, 512>}, {transform_indices = @transform_2, window_bounds = array<i64: 16, 512>}, {transform_indices = @transform_3, window_bounds = array<i64: 16, 512>}]} {
    %c0 = arith.constant 0 : index
    %0 = memref.load %arg1[%c0] : memref<1xf32, #tpu.memory_space<smem>>
    %c0_0 = arith.constant 0 : index
    %c0_1 = arith.constant 0 : index
    %1 = vector.load %arg2[%c0_0, %c0_1] : memref<16x512xi32, #tpu.memory_space<vmem>>, vector<16x512xi32>
    %c16777215_i32 = arith.constant 16777215 : i32
    %2 = vector.broadcast %c16777215_i32 : i32 to vector<16x512xi32>
    %3 = arith.andi %1, %2 : vector<16x512xi32>
    %4 = arith.sitofp %3 : vector<16x512xi32> to vector<16x512xf32>
    %cst = arith.constant 5.000000e-01 : f32
    %5 = vector.broadcast %cst : f32 to vector<16x512xf32>
    %6 = arith.addf %4, %5 : vector<16x512xf32>
    %cst_2 = arith.constant 5.96046448E-8 : f32
    %7 = vector.broadcast %cst_2 : f32 to vector<16x512xf32>
    %8 = arith.mulf %6, %7 : vector<16x512xf32>
    %cst_3 = arith.constant 2.000000e+00 : f32
    %9 = vector.broadcast %cst_3 : f32 to vector<16x512xf32>
    %10 = arith.mulf %9, %8 : vector<16x512xf32>
    %cst_4 = arith.constant 1.000000e+00 : f32
    %11 = vector.broadcast %cst_4 : f32 to vector<16x512xf32>
    %12 = arith.subf %10, %11 : vector<16x512xf32>
    %cst_5 = arith.constant 0.000000e+00 : f32
    %13 = vector.broadcast %cst_5 : f32 to vector<16x512xf32>
    %14 = arith.subf %13, %12 : vector<16x512xf32>
    %15 = arith.mulf %12, %14 : vector<16x512xf32>
    %16 = math.log1p %15 : vector<16x512xf32>
    %cst_6 = arith.constant 0.000000e+00 : f32
    %17 = vector.broadcast %cst_6 : f32 to vector<16x512xf32>
    %18 = arith.subf %17, %16 : vector<16x512xf32>
    %cst_7 = arith.constant 5.000000e+00 : f32
    %19 = vector.broadcast %cst_7 : f32 to vector<16x512xf32>
    %20 = arith.cmpf olt, %18, %19 : vector<16x512xf32>
    %cst_8 = arith.constant 2.500000e+00 : f32
    %21 = vector.broadcast %cst_8 : f32 to vector<16x512xf32>
    %22 = arith.subf %18, %21 : vector<16x512xf32>
    %23 = math.sqrt %18 : vector<16x512xf32>
    %cst_9 = arith.constant 3.000000e+00 : f32
    %24 = vector.broadcast %cst_9 : f32 to vector<16x512xf32>
    %25 = arith.subf %23, %24 : vector<16x512xf32>
    %26 = arith.select %20, %22, %25 : vector<16x512xi1>, vector<16x512xf32>
    %cst_10 = arith.constant 2.81022636E-8 : f32
    %cst_11 = arith.constant -2.00214257E-4 : f32
    %27 = vector.broadcast %cst_10 : f32 to vector<16x512xf32>
    %28 = vector.broadcast %cst_11 : f32 to vector<16x512xf32>
    %29 = arith.select %20, %27, %28 : vector<16x512xi1>, vector<16x512xf32>
    %cst_12 = arith.constant 3.43273939E-7 : f32
    %cst_13 = arith.constant 1.00950558E-4 : f32
    %30 = vector.broadcast %cst_12 : f32 to vector<16x512xf32>
    %31 = vector.broadcast %cst_13 : f32 to vector<16x512xf32>
    %32 = arith.select %20, %30, %31 : vector<16x512xi1>, vector<16x512xf32>
    %33 = arith.mulf %29, %26 : vector<16x512xf32>
    %34 = arith.addf %32, %33 : vector<16x512xf32>
    %cst_14 = arith.constant -3.5233877E-6 : f32
    %cst_15 = arith.constant 0.00134934322 : f32
    %35 = vector.broadcast %cst_14 : f32 to vector<16x512xf32>
    %36 = vector.broadcast %cst_15 : f32 to vector<16x512xf32>
    %37 = arith.select %20, %35, %36 : vector<16x512xi1>, vector<16x512xf32>
    %38 = arith.mulf %34, %26 : vector<16x512xf32>
    %39 = arith.addf %37, %38 : vector<16x512xf32>
    %cst_16 = arith.constant -4.39150654E-6 : f32
    %cst_17 = arith.constant -0.00367342844 : f32
    %40 = vector.broadcast %cst_16 : f32 to vector<16x512xf32>
    %41 = vector.broadcast %cst_17 : f32 to vector<16x512xf32>
    %42 = arith.select %20, %40, %41 : vector<16x512xi1>, vector<16x512xf32>
    %43 = arith.mulf %39, %26 : vector<16x512xf32>
    %44 = arith.addf %42, %43 : vector<16x512xf32>
    %cst_18 = arith.constant 2.1858087E-4 : f32
    %cst_19 = arith.constant 0.00573950773 : f32
    %45 = vector.broadcast %cst_18 : f32 to vector<16x512xf32>
    %46 = vector.broadcast %cst_19 : f32 to vector<16x512xf32>
    %47 = arith.select %20, %45, %46 : vector<16x512xi1>, vector<16x512xf32>
    %48 = arith.mulf %44, %26 : vector<16x512xf32>
    %49 = arith.addf %47, %48 : vector<16x512xf32>
    %cst_20 = arith.constant -0.00125372503 : f32
    %cst_21 = arith.constant -0.0076224613 : f32
    %50 = vector.broadcast %cst_20 : f32 to vector<16x512xf32>
    %51 = vector.broadcast %cst_21 : f32 to vector<16x512xf32>
    %52 = arith.select %20, %50, %51 : vector<16x512xi1>, vector<16x512xf32>
    %53 = arith.mulf %49, %26 : vector<16x512xf32>
    %54 = arith.addf %52, %53 : vector<16x512xf32>
    %cst_22 = arith.constant -0.00417768164 : f32
    %cst_23 = arith.constant 0.00943887047 : f32
    %55 = vector.broadcast %cst_22 : f32 to vector<16x512xf32>
    %56 = vector.broadcast %cst_23 : f32 to vector<16x512xf32>
    %57 = arith.select %20, %55, %56 : vector<16x512xi1>, vector<16x512xf32>
    %58 = arith.mulf %54, %26 : vector<16x512xf32>
    %59 = arith.addf %57, %58 : vector<16x512xf32>
    %cst_24 = arith.constant 0.246640727 : f32
    %cst_25 = arith.constant 1.00167406 : f32
    %60 = vector.broadcast %cst_24 : f32 to vector<16x512xf32>
    %61 = vector.broadcast %cst_25 : f32 to vector<16x512xf32>
    %62 = arith.select %20, %60, %61 : vector<16x512xi1>, vector<16x512xf32>
    %63 = arith.mulf %59, %26 : vector<16x512xf32>
    %64 = arith.addf %62, %63 : vector<16x512xf32>
    %cst_26 = arith.constant 1.50140941 : f32
    %cst_27 = arith.constant 2.83297682 : f32
    %65 = vector.broadcast %cst_26 : f32 to vector<16x512xf32>
    %66 = vector.broadcast %cst_27 : f32 to vector<16x512xf32>
    %67 = arith.select %20, %65, %66 : vector<16x512xi1>, vector<16x512xf32>
    %68 = arith.mulf %64, %26 : vector<16x512xf32>
    %69 = arith.addf %67, %68 : vector<16x512xf32>
    %70 = math.absf %12 : vector<16x512xf32>
    %cst_28 = arith.constant 1.000000e+00 : f32
    %71 = vector.broadcast %cst_28 : f32 to vector<16x512xf32>
    %72 = arith.cmpf oeq, %70, %71 : vector<16x512xf32>
    %cst_29 = arith.constant 0x7F800000 : f32
    %73 = vector.broadcast %cst_29 : f32 to vector<16x512xf32>
    %74 = arith.mulf %73, %12 : vector<16x512xf32>
    %75 = arith.mulf %69, %12 : vector<16x512xf32>
    %76 = arith.select %72, %74, %75 : vector<16x512xi1>, vector<16x512xf32>
    %cst_30 = arith.constant 1.41421354 : f32
    %77 = vector.broadcast %cst_30 : f32 to vector<16x512xf32>
    %78 = arith.mulf %77, %76 : vector<16x512xf32>
    %c0_31 = arith.constant 0 : index
    %c0_32 = arith.constant 0 : index
    %79 = vector.load %arg3[%c0_31, %c0_32] : memref<16x512xf32, #tpu.memory_space<vmem>>, vector<16x512xf32>
    %80 = vector.broadcast %0 : f32 to vector<16x512xf32>
    %81 = arith.mulf %78, %80 : vector<16x512xf32>
    %82 = arith.addf %79, %81 : vector<16x512xf32>
    %c0_33 = arith.constant 0 : index
    %c0_34 = arith.constant 0 : index
    %83 = vector.load %arg4[%c0_33, %c0_34] : memref<16x512xf32, #tpu.memory_space<vmem>>, vector<16x512xf32>
    tpu.vector_store %arg4[%c0_33, %c0_34], %82 {strides = array<i32>} : memref<16x512xf32, #tpu.memory_space<vmem>>, vector<16x512xf32>,
    return
  }
  func.func @transform_0(%arg0: i32) -> i32 {
    %c0_i32 = arith.constant 0 : i32
    %c0_i32_0 = arith.constant 0 : i32
    return %c0_i32 : i32
  }
  func.func @transform_1(%arg0: i32) -> (i32, i32) {
    %c0_i32 = arith.constant 0 : i32
    %c0_i32_0 = arith.constant 0 : i32
    return %arg0, %c0_i32 : i32, i32
  }
  func.func @transform_2(%arg0: i32) -> (i32, i32) {
    %c0_i32 = arith.constant 0 : i32
    %c0_i32_0 = arith.constant 0 : i32
    return %arg0, %c0_i32 : i32, i32
  }
  func.func @transform_3(%arg0: i32) -> (i32, i32) {
    %c0_i32 = arith.constant 0 : i32
    %c0_i32_0 = arith.constant 0 : i32
    return %arg0, %c0_i32 : i32, i32
  }
}

</mosaic_0001>

<bundles_post_ra>
// kernel: tpu_custom_call.1
= control target key start
LH: loop header
LB: loop body
LE: loop exit
PB: predicated region body
PF: predicated region fallthrough
CT: control target
= control target key end

     0   :  { %9 = vsyncpa [#allocation4], 0  ;;  %s1437_s0 = inlined_call_operand.<no memory space> [shape: f32[1], index: 0, kind: input, shape index: {}]   ;;  %s1438_s1 = inlined_call_operand.vmem [shape: s32[16,512], index: 1, kind: input, shape index: {}]   ;;  %s1439_s2 = inlined_call_operand.hbm [shape: f32[16,512], index: 2, kind: input, shape index: {}, may-alias: {2,3}]   ;;  %s1440_s3 = inlined_call_operand.hbm [shape: f32[16,512], index: 3, kind: output, shape index: {}, may-alias: {2,3}]  }
   0x1   :  { %10 = vsyncpa [#allocation5], 0  ;;  %s19_s14 = sshll.u32 %s1439_s2, 4  ;;  %s734_s15 = smov [#allocation3]   ;;  %s20_s14 = int_to_ptr.hbm [resolvable:$true] %s19_s14 }
   0x2   :  { %s21_s16 = sshll.u32 %s734_s15, 4  ;;  %s735_s17 = smov 512   ;;  %s22_s16 = int_to_ptr.vmem [resolvable:$true] %s21_s16 }
   0x3   :  { %s736_s18 = smov 32  }
   0x4   :  { %27 = dma.hbm_to_vmem [thread:$0]  %s20_s14, 1024, %s22_s16, [#allocation4], %s735_s17, %s735_s17, %s736_s18  }
   0x5   :  { %730 = dma.done.wait [#allocation4], 1024  }
   0x6   :  { %731 = vsyncadd [#allocation4], 4294966272  ;;  %v33_v0 = vld [vmem:[%s1438_s1] sm:$0xff]  ;;  %v34_v1 = vld [vmem:[%s1438_s1 + $0x8] sm:$0xff]  ;;  %s600_s11 = sshll.u32 %s1440_s3, 4  ;;  %s601_s11 = int_to_ptr.hbm [resolvable:$true] %s600_s11 }
   0x7   :  { %v35_v2 = vld [vmem:[%s1438_s1 + $0x10] sm:$0xff]  ;;  %v41_v3 = vand.u32 16777215, %v33_v0  ;;  %v42_v4 = vand.u32 16777215, %v34_v1  ;;  %v36_v6 = vld [vmem:[%s1438_s1 + $0x18] sm:$0xff] }
   0x8   :  { %v43_v5 = vand.u32 16777215, %v35_v2  ;;  %v37_v7 = vld [vmem:[%s1438_s1 + $0x20] sm:$0xff]  ;;  %v38_v8 = vld [vmem:[%s1438_s1 + $0x28] sm:$0xff]  ;;  %v44_v12 = vand.u32 16777215, %v36_v6 }
   0x9   :  { %v49_v9 = vcvt.s32.f32 %v41_v3  ;;  %v50_v10 = vcvt.s32.f32 %v42_v4  ;;  %v45_v13 = vand.u32 16777215, %v37_v7  ;;  %v46_v14 = vand.u32 16777215, %v38_v8 }
   0xa   :  { %v51_v11 = vcvt.s32.f32 %v43_v5  ;;  %v52_v18 = vcvt.s32.f32 %v44_v12 }
   0xb   :  { %v57_v15 = vadd.f32 0.5, %v49_v9  ;;  %v58_v16 = vadd.f32 0.5, %v50_v10  ;;  %v53_v19 = vcvt.s32.f32 %v45_v13  ;;  %v54_v20 = vcvt.s32.f32 %v46_v14 }
   0xc   :  { %v59_v17 = vadd.f32 0.5, %v51_v11  ;;  %v60_v24 = vadd.f32 0.5, %v52_v18 }
   0xd   :  { %v65_v21 = vmul.f32 5.9604645e-08, %v57_v15  ;;  %v66_v22 = vmul.f32 5.9604645e-08, %v58_v16  ;;  %v61_v25 = vadd.f32 0.5, %v53_v19  ;;  %v62_v26 = vadd.f32 0.5, %v54_v20 }
   0xe   :  { %v67_v23 = vmul.f32 5.9604645e-08, %v59_v17  ;;  %v68_v30 = vmul.f32 5.9604645e-08, %v60_v24 }
   0xf   :  { %v73_v27 = vmul.f32 2.0, %v65_v21  ;;  %v74_v28 = vmul.f32 2.0, %v66_v22  ;;  %v69_v31 = vmul.f32 5.9604645e-08, %v61_v25  ;;  %v70_v36 = vmul.f32 5.9604645e-08, %v62_v26  ;;  %v39_v21 = vld [vmem:[%s1438_s1 + $0x30] sm:$0xff] }
  0x10   :  { %v75_v29 = vmul.f32 2.0, %v67_v23  ;;  %v76_v35 = vmul.f32 2.0, %v68_v30 }
  0x11   :  { %v791_v32 = vadd.f32 -1.0, %v73_v27  ;;  %v793_v33 = vadd.f32 -1.0, %v74_v28  ;;  %v77_v44 = vmul.f32 2.0, %v69_v31  ;;  %v78_v45 = vmul.f32 2.0, %v70_v36 }
  0x12   :  { %v795_v34 = vadd.f32 -1.0, %v75_v29  ;;  %v800_v40 = vadd.f32 -1.0, %v76_v35  ;;  %v47_v28 = vand.u32 16777215, %v39_v21 }
  0x13   :  { %v89_v37 = vsub.f32 0.0, %v791_v32  ;;  %v90_v38 = vsub.f32 0.0, %v793_v33  ;;  %v806_v53 = vadd.f32 -1.0, %v77_v44  ;;  %v808_v55 = vadd.f32 -1.0, %v78_v45 }
  0x14   :  { %v91_v39 = vsub.f32 0.0, %v795_v34  ;;  %v92_v51 = vsub.f32 0.0, %v800_v40  ;;  %v737_v44 = vmov -0.00020021426  }
  0x15   :  { %v97_v41 = vmul.f32 %v791_v32, %v89_v37  ;;  %v98_v42 = vmul.f32 %v793_v33, %v90_v38  ;;  %v93_v61 = vsub.f32 0.0, %v806_v53  ;;  %v94_v0 = vsub.f32 0.0, %v808_v55 }
  0x16   :  { %v99_v43 = vmul.f32 %v795_v34, %v91_v39  ;;  %v100_v59 = vmul.f32 %v800_v40, %v92_v51 }
  0x17   :  { %v105_v46 = vadd.f32 1.0, %v97_v41  ;;  %v108_v47 = vmul.f32 -0.5, %v97_v41  ;;  %v114_v48 = vadd.f32 1.0, %v98_v42  ;;  %v117_v49 = vmul.f32 -0.5, %v98_v42 }
  0x18   :  { %v123_v50 = vadd.f32 1.0, %v99_v43  ;;  %v126_v52 = vmul.f32 -0.5, %v99_v43  ;;  %v111_v56 = vand.u32 2147483647, %v97_v41  ;;  %v120_v58 = vand.u32 2147483647, %v98_v42 }
  0x19   :  { %650 = vlog2.f32 %v105_v46  ;;  %v109_v54 = vadd.f32 1.0, %v108_v47  ;;  %v118_v57 = vadd.f32 1.0, %v117_v49  ;;  %v132_v63 = vadd.f32 1.0, %v100_v59 }
  0x1a   :  { %652 = vlog2.f32 %v114_v48  ;;  %v127_v60 = vadd.f32 1.0, %v126_v52  ;;  %vm112_vm0 = vcmp.lt.f32.partialorder %v111_v56, 0.0004427343  ;;  %vm121_vm1 = vcmp.lt.f32.partialorder %v120_v58, 0.0004427343 }
  0x1b   :  { %654 = vlog2.f32 %v123_v50  ;;  %v110_v62 = vmul.f32 %v109_v54, %v97_v41  ;;  %v119_v2 = vmul.f32 %v118_v57, %v98_v42  ;;  %v129_v5 = vand.u32 2147483647, %v99_v43 }
  0x1c   :  { %v128_v8 = vmul.f32 %v127_v60, %v99_v43  ;;  %v101_v9 = vmul.f32 %v806_v53, %v93_v61  ;;  %656 = vlog2.f32 %v132_v63  ;;  %v135_v11 = vmul.f32 -0.5, %v100_v59 }
  0x1d   :  { %v815_v12 = vmul.f32 %v808_v55, %v94_v0  ;;  %vm130_vm2 = vcmp.lt.f32.partialorder %v129_v5, 0.0004427343  ;;  %v138_v18 = vand.u32 2147483647, %v100_v59  ;;  %v738_v46 = vmov 0.00010095056  }
  0x1e   :  { %v144_v16 = vmul.f32 -0.5, %v101_v9  ;;  %v136_v19 = vadd.f32 1.0, %v135_v11  ;;  %v141_v20 = vadd.f32 1.0, %v101_v9  ;;  %v147_v26 = vand.u32 2147483647, %v101_v9 }
  0x1f   :  { %v651_v1 = vpop.eup %650  ;;  %v150_v24 = vadd.f32 1.0, %v815_v12  ;;  %vm827_vm3 = vcmp.lt.f32.partialorder %v138_v18, 0.0004427343  ;;  %v153_v41 = vmul.f32 -0.5, %v815_v12  ;;  %v739_v49 = vmov 0.0013493432  }
  0x20   :  { %v653_v3 = vpop.eup %652  ;;  %v107_v4 = vmul.f32 0.6931472, %v651_v1  ;;  %v145_v23 = vadd.f32 1.0, %v144_v16  ;;  %v137_v30 = vmul.f32 %v136_v19, %v100_v59  ;;  %vm840_vm5 = vcmp.lt.f32.partialorder %v147_v26, 0.0004427343 }
  0x21   :  { %v655_v6 = vpop.eup %654  ;;  %v116_v7 = vmul.f32 0.6931472, %v653_v3  ;;  %v1441_v52 = vmov -0.0036734284   ;;  %v741_v56 = vmov 0.0057395077   ;;  %v900_v11 = vcvt.s32.f32 %v47_v28 }
  0x22   :  { %v113_v10 = vsel %vm112_vm0, %v110_v62, %v107_v4  ;;  %v125_v15 = vmul.f32 0.6931472, %v655_v6  ;;  %v657_v25 = vpop.eup %656  ;;  %v834_v36 = vmul.f32 %v145_v23, %v101_v9 }
  0x23   :  { %v817_v13 = vsub.f32 0.0, %v113_v10  ;;  %v122_v14 = vsel %vm121_vm1, %v119_v2, %v116_v7  ;;  %v134_v35 = vmul.f32 0.6931472, %v657_v25  ;;  %v154_v10 = vadd.f32 1.0, %v153_v41 }
  0x24   :  { %v819_v17 = vsub.f32 0.0, %v122_v14  ;;  %v131_v22 = vsel %vm130_vm2, %v128_v8, %v125_v15  ;;  %v742_v15 = vmov -0.0076224613  }
  0x25   :  { %658 = vrsqrt.f32 %v817_v13  ;;  %vm185_vm4 = vcmp.lt.f32.partialorder %v817_v13, 5.0  ;;  %v832_v29 = vsub.f32 0.0, %v131_v22  ;;  %v837_v37 = vadd.f32 -2.5, %v817_v13 }
  0x26   :  { %660 = vrsqrt.f32 %v819_v17  ;;  %vm208_vm6 = vcmp.eq.f32.partialorder %v817_v13, inf  ;;  %v211_v43 = vand.u32 2147483648, %v817_v13  ;;  %v850_v45 = vsel %vm185_vm4, 2.8102264e-08, %v737_v44 }
  0x27   :  { %662 = vlog2.f32 %v141_v20  ;;  %v855_v47 = vsel %vm185_vm4, 3.4327394e-07, %v738_v46  ;;  %vm210_vm7 = vcmp.eq.f32.partialorder %v817_v13, 0.0  ;;  %v862_v50 = vsel %vm185_vm4, -3.5233877e-06, %v739_v49 }
  0x28   :  { %664 = vlog2.f32 %v150_v24  ;;  %vm186_vm8 = vcmp.lt.f32.partialorder %v819_v17, 5.0  ;;  %v869_v54 = vsel %vm185_vm4, -4.3915065e-06, %v1441_v52  ;;  %v874_v57 = vsel %vm185_vm4, 0.00021858087, %v741_v56 }
  0x29   :  { %666 = vrsqrt.f32 %v832_v29  ;;  %v622_v58 = vadd.f32 -2.5, %v819_v17  ;;  %v140_v59 = vsel %vm827_vm3, %v137_v30, %v134_v35  ;;  %vm220_vm9 = vcmp.eq.f32.partialorder %v819_v17, inf }
  0x2a   :  { %vm222_vm10 = vcmp.eq.f32.partialorder %v819_v17, 0.0  ;;  %v223_v0 = vand.u32 2147483648, %v819_v17  ;;  %v314_v1 = vsel %vm186_vm8, 2.8102264e-08, %v737_v44  ;;  %v885_v2 = vsub.f32 0.0, %v140_v59 }
  0x2b   :  { %v659_v31 = vpop.eup %658  ;;  %v322_v5 = vsel %vm186_vm8, 3.4327394e-07, %v738_v46  ;;  %v893_v6 = vsel %vm186_vm8, -3.5233877e-06, %v739_v49  ;;  %v898_v8 = vsel %vm186_vm8, -4.3915065e-06, %v1441_v52 }
  0x2c   :  { %v202_v38 = vmul.f32 %v659_v31, %v817_v13  ;;  %v661_v42 = vpop.eup %660  ;;  %v905_v16 = vsel %vm185_vm4, -0.001253725, %v742_v15  ;;  %v910_v19 = vsel %vm186_vm8, 0.00021858087, %v741_v56  ;;  %vm187_vm11 = vcmp.lt.f32.partialorder %v832_v29, 5.0 }
  0x2d   :  { %v214_v51 = vmul.f32 %v661_v42, %v819_v17  ;;  %v663_v60 = vpop.eup %662  ;;  %v914_v20 = vadd.f32 -2.5, %v832_v29  ;;  %668 = vrsqrt.f32 %v885_v2  ;;  %vm232_vm12 = vcmp.eq.f32.partialorder %v832_v29, inf }
  0x2e   :  { %v203_v48 = vmul.f32 %v659_v31, %v202_v38  ;;  %v665_v63 = vpop.eup %664  ;;  %v143_v9 = vmul.f32 0.6931472, %v663_v60  ;;  %vm234_vm13 = vcmp.eq.f32.partialorder %v832_v29, 0.0  ;;  %v235_v25 = vand.u32 2147483648, %v832_v29 }
  0x2f   :  { %v215_v62 = vmul.f32 %v661_v42, %v214_v51  ;;  %v667_v7 = vpop.eup %666  ;;  %v315_v30 = vsel %vm187_vm11, 2.8102264e-08, %v737_v44  ;;  %v743_v38 = vmov 0.0094388705   ;;  %v947_v41 = vsel %vm187_vm11, -3.5233877e-06, %v739_v49 }
  0x30   :  { %v204_v61 = vmul.f32 0.5, %v203_v48  ;;  %v226_v21 = vmul.f32 %v667_v7, %v832_v29  ;;  %v149_v26 = vsel %vm840_vm5, %v834_v36, %v143_v9  ;;  %v942_v36 = vsel %vm185_vm4, -0.0041776816, %v743_v38 }
  0x31   :  { %v216_v4 = vmul.f32 0.5, %v215_v62  ;;  %v957_v51 = vsub.f32 0.0, %v149_v26  ;;  %v964_v62 = vsel %vm187_vm11, -4.3915065e-06, %v1441_v52  ;;  %vm188_vm14 = vcmp.lt.f32.partialorder %v885_v2, 5.0 }
  0x32   :  { %v205_v3 = vsub.f32 1.5, %v204_v61  ;;  %v227_v24 = vmul.f32 %v667_v7, %v226_v21  ;;  %v981_v21 = vsel %vm187_vm11, 0.00021858087, %v741_v56  ;;  %vm244_vm15 = vcmp.eq.f32.partialorder %v885_v2, inf }
  0x33   :  { %v217_v18 = vsub.f32 1.5, %v216_v4  ;;  %v669_v59 = vpop.eup %668  ;;  %670 = vrsqrt.f32 %v957_v51  ;;  %vm246_vm0 = vcmp.eq.f32.partialorder %v885_v2, 0.0  ;;  %vm189_vm1 = vcmp.lt.f32.partialorder %v957_v51, 5.0 }
  0x34   :  { %v206_v14 = vmul.f32 %v659_v31, %v205_v3  ;;  %v935_v31 = vsel %vm187_vm11, 3.4327394e-07, %v738_v46  ;;  %v228_v39 = vmul.f32 0.5, %v227_v24  ;;  %v966_v3 = vmul.f32 0.6931472, %v665_v63 }
  0x35   :  { %v218_v23 = vmul.f32 %v661_v42, %v217_v18  ;;  %v238_v63 = vmul.f32 %v669_v59, %v885_v2  ;;  %v1004_v24 = vsel %vm186_vm8, -0.0041776816, %v743_v38  ;;  %vm256_vm2 = vcmp.eq.f32.partialorder %v957_v51, inf }
  0x36   :  { %v207_v22 = vmul.f32 %v206_v14, %v817_v13  ;;  %v229_v61 = vsub.f32 1.5, %v228_v39  ;;  %v974_v14 = vmul.f32 %v154_v10, %v815_v12  ;;  %vm258_vm3 = vcmp.eq.f32.partialorder %v957_v51, 0.0 }
  0x37   :  { %v219_v28 = vmul.f32 %v218_v23, %v819_v17  ;;  %v239_v26 = vmul.f32 %v669_v59, %v238_v63  ;;  %v247_v63 = vand.u32 2147483648, %v885_v2 }
  0x38   :  { %v209_v27 = vsel %vm208_vm6, %v817_v13, %v207_v22  ;;  %v230_v18 = vmul.f32 %v667_v7, %v229_v61  ;;  %v744_v7 = vmov 1.001674   ;;  %v324_v61 = vsel %vm188_vm14, 3.4327394e-07, %v738_v46 }
  0x39   :  { %v212_v35 = vsel %vm210_vm7, %v211_v43, %v209_v27  ;;  %v221_v48 = vsel %vm220_vm9, %v819_v17, %v219_v28  ;;  %v955_v43 = vsel %vm186_vm8, -0.001253725, %v742_v15  ;;  %v997_v10 = vsel %vm185_vm4, 0.24664073, %v744_v7 }
  0x3a   :  { %v629_v42 = vadd.f32 -3.0, %v212_v35  ;;  %v224_v60 = vsel %vm222_vm10, %v223_v0, %v221_v48  ;;  %v1017_v35 = vsel %vm187_vm11, -0.001253725, %v742_v15  ;;  %v240_v39 = vmul.f32 0.5, %v239_v26 }
  0x3b   :  { %v630_v9 = vadd.f32 -3.0, %v224_v60  ;;  %v1048_v13 = vsel %vm188_vm14, -3.5233877e-06, %v739_v49 }
  0x3c   :  { %v971_v4 = vsel %vm185_vm4, %v837_v37, %v629_v42  ;;  %v990_v37 = vadd.f32 -2.5, %v885_v2  ;;  %v316_v42 = vsel %vm188_vm14, 2.8102264e-08, %v737_v44 }
  0x3d   :  { %v329_v0 = vmul.f32 %v850_v45, %v971_v4  ;;  %v986_v22 = vsel %vm186_vm8, %v622_v58, %v630_v9  ;;  %v231_v58 = vmul.f32 %v230_v18, %v832_v29  ;;  %v745_v9 = vmov 2.8329768  }
  0x3e   :  { %v330_v23 = vmul.f32 %v314_v1, %v986_v22  ;;  %v1035_v18 = vsel %vm186_vm8, 0.24664073, %v744_v7 }
  0x3f   :  { %v337_v45 = vadd.f32 %v329_v0, %v855_v47  ;;  %v233_v28 = vsel %vm232_vm12, %v832_v29, %v231_v58  ;;  %v1030_v0 = vsel %vm185_vm4, 1.5014094, %v745_v9 }
  0x40   :  { %v338_v27 = vadd.f32 %v330_v23, %v322_v5  ;;  %v236_v1 = vsel %vm234_vm13, %v235_v25, %v233_v28  ;;  %v671_v25 = vpop.eup %670 }
  0x41   :  { %v353_v47 = vmul.f32 %v337_v45, %v971_v4  ;;  %v631_v60 = vadd.f32 -3.0, %v236_v1 }
  0x42   :  { %v354_v5 = vmul.f32 %v338_v27, %v986_v22  ;;  %v1054_v27 = vsel %vm188_vm14, -4.3915065e-06, %v1441_v52 }
  0x43   :  { %v361_v48 = vadd.f32 %v353_v47, %v862_v50  ;;  %v241_v50 = vsub.f32 1.5, %v240_v39  ;;  %v1043_v58 = vsel %vm187_vm11, %v914_v20, %v631_v60  ;;  %v513_v20 = vand.u32 2147483647, %v791_v32 }
  0x44   :  { %v362_v23 = vadd.f32 %v354_v5, %v893_v6  ;;  %v331_v26 = vmul.f32 %v315_v30, %v1043_v58  ;;  %v250_v6 = vmul.f32 %v671_v25, %v957_v51  ;;  %v625_v39 = vadd.f32 -2.5, %v957_v51 }
  0x45   :  { %v377_v45 = vmul.f32 %v361_v48, %v971_v4  ;;  %v242_v47 = vmul.f32 %v669_v59, %v241_v50  ;;  %v1062_v48 = vmul.f32 inf, %v791_v32  ;;  %vm1144_vm5 = vcmp.eq.f32.partialorder %v513_v20, 1.0 }
  0x46   :  { %v378_v1 = vmul.f32 %v362_v23, %v986_v22  ;;  %v339_v30 = vadd.f32 %v331_v26, %v935_v31  ;;  %v251_v5 = vmul.f32 %v671_v25, %v250_v6  ;;  %v514_v31 = vand.u32 2147483647, %v793_v33 }
  0x47   :  { %v385_v28 = vadd.f32 %v377_v45, %v869_v54  ;;  %v243_v59 = vmul.f32 %v242_v47, %v885_v2  ;;  %v1071_v54 = vsel %vm186_vm8, 1.5014094, %v745_v9  ;;  %v1076_v45 = vsel %vm187_vm11, -0.0041776816, %v743_v38 }
  0x48   :  { %v386_v50 = vadd.f32 %v378_v1, %v898_v8  ;;  %v355_v23 = vmul.f32 %v339_v30, %v1043_v58  ;;  %v252_v26 = vmul.f32 0.5, %v251_v5  ;;  %v1094_v1 = vmul.f32 inf, %v793_v33 }
  0x49   :  { %v401_v60 = vmul.f32 %v385_v28, %v971_v4  ;;  %v245_v8 = vsel %vm244_vm15, %v885_v2, %v243_v59  ;;  %v1091_v28 = vsel %vm188_vm14, 0.00021858087, %v741_v56  ;;  %vm1163_vm6 = vcmp.eq.f32.partialorder %v514_v31, 1.0  ;;  %v40_v2 = vld [vmem:[%s1438_s1 + $0x38] sm:$0xff]  ;;  %s746_s1 = smov [#allocation6]  }
  0x4a   :  { %v402_v47 = vmul.f32 %v386_v50, %v986_v22  ;;  %v248_v6 = vsel %vm246_vm0, %v247_v63, %v245_v8  ;;  %v363_v30 = vadd.f32 %v355_v23, %v947_v41  ;;  %v253_v59 = vsub.f32 1.5, %v252_v26  ;;  %s598_s8 = sshll.u32 %s746_s1, 4  ;;  %s599_s8 = int_to_ptr.vmem [resolvable:$true] %s598_s8 }
  0x4b   :  { %v409_v17 = vadd.f32 %v401_v60, %v874_v57  ;;  %v632_v52 = vadd.f32 -3.0, %v248_v6  ;;  %v1101_v57 = vstv %s1437_s0  ;;  %v156_v60 = vand.u32 2147483647, %v815_v12 }
  0x4c   :  { %v410_v63 = vadd.f32 %v402_v47, %v910_v19  ;;  %v379_v50 = vmul.f32 %v363_v30, %v1043_v58  ;;  %v254_v41 = vmul.f32 %v671_v25, %v253_v59  ;;  %v259_v19 = vand.u32 2147483648, %v957_v51 }
  0x4d   :  { %v425_v5 = vmul.f32 %v409_v17, %v971_v4  ;;  %v1109_v8 = vsel %vm188_vm14, %v990_v37, %v632_v52  ;;  %v1120_v47 = vsel %vm187_vm11, 0.24664073, %v744_v7  ;;  %vm1126_vm4 = vcmp.lt.f32.partialorder %v156_v60, 0.0004427343  ;;  %v561_v60 = vld [vmem:[#allocation3] sm:$0xff] }
  0x4e   :  { %v426_v26 = vmul.f32 %v410_v63, %v986_v22  ;;  %v332_v17 = vmul.f32 %v316_v42, %v1109_v8  ;;  %v387_v12 = vadd.f32 %v379_v50, %v964_v62  ;;  %v255_v52 = vmul.f32 %v254_v41, %v957_v51 }
  0x4f   :  { %v433_v23 = vadd.f32 %v425_v5, %v905_v16  ;;  %v1134_v6 = vsel %vm188_vm14, -0.001253725, %v742_v15  ;;  %v158_v59 = vsel %vm1126_vm4, %v974_v14, %v966_v3  ;;  %v1152_v41 = vsel %vm187_vm11, 1.5014094, %v745_v9 }
  0x50   :  { %v434_v16 = vadd.f32 %v426_v26, %v955_v43  ;;  %v340_v25 = vadd.f32 %v332_v17, %v324_v61  ;;  %v403_v62 = vmul.f32 %v387_v12, %v1043_v58  ;;  %v257_v30 = vsel %vm256_vm2, %v957_v51, %v255_v52 }
  0x51   :  { %v449_v37 = vmul.f32 %v433_v23, %v971_v4  ;;  %v260_v63 = vsel %vm258_vm3, %v259_v19, %v257_v30  ;;  %v1172_v19 = vsub.f32 0.0, %v158_v59  ;;  %v48_v26 = vand.u32 16777215, %v40_v2 }
  0x52   :  { %v450_v61 = vmul.f32 %v434_v16, %v986_v22  ;;  %v356_v5 = vmul.f32 %v340_v25, %v1109_v8  ;;  %v411_v50 = vadd.f32 %v403_v62, %v981_v21  ;;  %v633_v23 = vadd.f32 -3.0, %v260_v63 }
  0x53   :  { %v457_v43 = vadd.f32 %v449_v37, %v942_v36  ;;  %v317_v36 = vsel %vm189_vm1, 2.8102264e-08, %v737_v44  ;;  %v325_v21 = vsel %vm189_vm1, 3.4327394e-07, %v738_v46  ;;  %v515_v16 = vand.u32 2147483647, %v795_v34 }
  0x54   :  { %v458_v14 = vadd.f32 %v450_v61, %v1004_v24  ;;  %v364_v20 = vadd.f32 %v356_v5, %v1048_v13  ;;  %v427_v29 = vmul.f32 %v411_v50, %v1043_v58  ;;  %v1170_v17 = vsel %vm189_vm1, %v625_v39, %v633_v23 }
  0x55   :  { %v473_v3 = vmul.f32 %v457_v43, %v971_v4  ;;  %v63_v24 = vadd.f32 0.5, %v900_v11  ;;  %v333_v31 = vmul.f32 %v317_v36, %v1170_v17  ;;  %v1182_v25 = vmul.f32 inf, %v795_v34 }
  0x56   :  { %v474_v12 = vmul.f32 %v458_v14, %v986_v22  ;;  %v380_v52 = vmul.f32 %v364_v20, %v1109_v8  ;;  %v435_v37 = vadd.f32 %v427_v29, %v1017_v35  ;;  %v444_v39 = vsel %vm188_vm14, -0.0041776816, %v743_v38 }
  0x57   :  { %v481_v13 = vadd.f32 %v473_v3, %v997_v10  ;;  %v341_v62 = vadd.f32 %v333_v31, %v325_v21  ;;  %v349_v35 = vsel %vm189_vm1, -3.5233877e-06, %v739_v49  ;;  %672 = vrsqrt.f32 %v1172_v19 }
  0x58   :  { %v482_v10 = vadd.f32 %v474_v12, %v1035_v18  ;;  %v388_v42 = vadd.f32 %v380_v52, %v1054_v27  ;;  %v451_v30 = vmul.f32 %v435_v37, %v1043_v58  ;;  %v71_v59 = vmul.f32 5.9604645e-08, %v63_v24 }
  0x59   :  { %v497_v11 = vmul.f32 %v481_v13, %v971_v4  ;;  %v357_v18 = vmul.f32 %v341_v62, %v1170_v17  ;;  %v468_v5 = vsel %vm188_vm14, 0.24664073, %v744_v7  ;;  %v1453_v63 = vmov -0.0036734284  }
  0x5a   :  { %v498_v61 = vmul.f32 %v482_v10, %v986_v22  ;;  %v404_v4 = vmul.f32 %v388_v42, %v1109_v8  ;;  %v459_v27 = vadd.f32 %v451_v30, %v1076_v45  ;;  %v373_v50 = vsel %vm189_vm1, -4.3915065e-06, %v1453_v63  ;;  %v562_v30 = vld [vmem:[#allocation3 + $0x8] sm:$0xff] }
  0x5b   :  { %v505_v43 = vadd.f32 %v497_v11, %v1030_v0  ;;  %v397_v0 = vsel %vm189_vm1, 0.00021858087, %v741_v56  ;;  %vm1211_vm7 = vcmp.eq.f32.partialorder %v515_v16, 1.0  ;;  %v365_v3 = vadd.f32 %v357_v18, %v349_v35 }
  0x5c   :  { %v506_v23 = vadd.f32 %v498_v61, %v1071_v54  ;;  %v412_v45 = vadd.f32 %v404_v4, %v1091_v28  ;;  %v475_v14 = vmul.f32 %v459_v27, %v1043_v58  ;;  %v1220_v20 = vsel %vm188_vm14, 1.5014094, %v745_v9 }
  0x5d   :  { %v537_v22 = vmul.f32 %v791_v32, %v505_v43  ;;  %v421_v32 = vsel %vm189_vm1, -0.001253725, %v742_v15  ;;  %v79_v21 = vmul.f32 2.0, %v71_v59  ;;  %v381_v24 = vmul.f32 %v365_v3, %v1170_v17  ;;  %v673_v13 = vpop.eup %672 }
  0x5e   :  { %v538_v29 = vmul.f32 %v793_v33, %v506_v23  ;;  %v428_v28 = vmul.f32 %v412_v45, %v1109_v8  ;;  %v483_v52 = vadd.f32 %v475_v14, %v1120_v47  ;;  %v516_v31 = vand.u32 2147483647, %v800_v40 }
  0x5f   :  { %v545_v54 = vsel %vm1144_vm5, %v1062_v48, %v537_v22  ;;  %v445_v48 = vsel %vm189_vm1, -0.0041776816, %v743_v38  ;;  %v389_v16 = vadd.f32 %v381_v24, %v373_v50  ;;  %v262_v11 = vmul.f32 %v673_v13, %v1172_v19 }
  0x60   :  { %v553_v12 = vmul.f32 1.4142135, %v545_v54  ;;  %v546_v33 = vsel %vm1163_vm6, %v1094_v1, %v538_v29  ;;  %v436_v37 = vadd.f32 %v428_v28, %v1134_v6  ;;  %v499_v47 = vmul.f32 %v483_v52, %v1043_v58 }
  0x61   :  { %v554_v42 = vmul.f32 1.4142135, %v546_v33  ;;  %v1246_v62 = vadd.f32 -1.0, %v79_v21  ;;  %v405_v59 = vmul.f32 %v389_v16, %v1170_v17  ;;  %v263_v43 = vmul.f32 %v673_v13, %v262_v11 }
  0x62   :  { %v570_v10 = vmul.f32 %v1101_v57, %v553_v12  ;;  %v452_v35 = vmul.f32 %v436_v37, %v1109_v8  ;;  %v507_v61 = vadd.f32 %v499_v47, %v1152_v41  ;;  %v532_v4 = vmul.f32 inf, %v800_v40  ;;  %v563_v12 = vld [vmem:[#allocation3 + $0x10] sm:$0xff] }
  0x63   :  { %v571_v6 = vmul.f32 %v1101_v57, %v554_v42  ;;  %v413_v27 = vadd.f32 %v405_v59, %v397_v0  ;;  %v264_v50 = vmul.f32 0.5, %v263_v43  ;;  %v95_v58 = vsub.f32 0.0, %v1246_v62 }
  0x64   :  { %v578_v1 = vadd.f32 %v570_v10, %v561_v60  ;;  %v460_v18 = vadd.f32 %v452_v35, %v444_v39  ;;  %v539_v23 = vmul.f32 %v795_v34, %v507_v61  ;;  %vm1255_vm8 = vcmp.eq.f32.partialorder %v516_v31, 1.0 }
  0x65   :  { %v579_v22 = vadd.f32 %v571_v6, %v562_v30  ;;  %v469_v3 = vsel %vm189_vm1, 0.24664073, %v744_v7  ;;  %v56_v41 = vcvt.s32.f32 %v48_v26  ;;  %v429_v39 = vmul.f32 %v413_v27, %v1170_v17 }
  0x66   :  { %586 = vst [vmem:[#allocation6] sm:$0xff] %v578_v1  ;;  %v476_v14 = vmul.f32 %v460_v18, %v1109_v8  ;;  %v265_v0 = vsub.f32 1.5, %v264_v50  ;;  %v103_v21 = vmul.f32 %v1246_v62, %v95_v58  ;;  %v547_v34 = vsel %vm1211_vm7, %v1182_v25, %v539_v23  ;;  %v564_v23 = vld [vmem:[#allocation3 + $0x18] sm:$0xff] }
  0x67   :  { %587 = vst [vmem:[#allocation6 + $0x8] sm:$0xff] %v579_v22  ;;  %vm268_vm9 = vcmp.eq.f32.partialorder %v1172_v19, inf  ;;  %vm270_vm10 = vcmp.eq.f32.partialorder %v1172_v19, 0.0  ;;  %v64_v54 = vadd.f32 0.5, %v56_v41  ;;  %v555_v29 = vmul.f32 1.4142135, %v547_v34 }
  0x68   :  { %v484_v28 = vadd.f32 %v476_v14, %v468_v5  ;;  %v437_v24 = vadd.f32 %v429_v39, %v421_v32  ;;  %v266_v2 = vmul.f32 %v673_v13, %v265_v0  ;;  %v271_v52 = vand.u32 2147483648, %v1172_v19 }
  0x69   :  { %v159_v31 = vadd.f32 1.0, %v103_v21  ;;  %v162_v60 = vmul.f32 -0.5, %v103_v21  ;;  %v72_v33 = vmul.f32 5.9604645e-08, %v64_v54  ;;  %v572_v37 = vmul.f32 %v1101_v57, %v555_v29 }
  0x6a   :  { %v500_v36 = vmul.f32 %v484_v28, %v1109_v8  ;;  %v453_v25 = vmul.f32 %v437_v24, %v1170_v17  ;;  %v267_v16 = vmul.f32 %v266_v2, %v1172_v19  ;;  %vm190_vm11 = vcmp.lt.f32.partialorder %v1172_v19, 5.0 }
  0x6b   :  { %v626_v5 = vadd.f32 -2.5, %v1172_v19  ;;  %674 = vlog2.f32 %v159_v31  ;;  %v163_v32 = vadd.f32 1.0, %v162_v60  ;;  %v580_v13 = vadd.f32 %v572_v37, %v563_v12  ;;  %v565_v37 = vld [vmem:[#allocation3 + $0x20] sm:$0xff] }
  0x6c   :  { %v508_v11 = vadd.f32 %v500_v36, %v1220_v20  ;;  %v461_v10 = vadd.f32 %v453_v25, %v445_v48  ;;  %v269_v42 = vsel %vm268_vm9, %v1172_v19, %v267_v16  ;;  %v493_v8 = vsel %vm189_vm1, 1.5014094, %v745_v9 }
  0x6d   :  { %v272_v47 = vsel %vm270_vm10, %v271_v52, %v269_v42  ;;  %v165_v30 = vand.u32 2147483647, %v103_v21  ;;  %v80_v35 = vmul.f32 2.0, %v72_v33  ;;  %588 = vst [vmem:[#allocation6 + $0x10] sm:$0xff] %v580_v13  ;;  %v318_v48 = vsel %vm190_vm11, 2.8102264e-08, %v737_v44 }
  0x6e   :  { %v540_v59 = vmul.f32 %v800_v40, %v508_v11  ;;  %v477_v43 = vmul.f32 %v461_v10, %v1170_v17  ;;  %v634_v20 = vadd.f32 -3.0, %v272_v47  ;;  %v517_v26 = vand.u32 2147483647, %v806_v53 }
  0x6f   :  { %v326_v51 = vsel %vm190_vm11, 3.4327394e-07, %v738_v46  ;;  %v1295_v1 = vadd.f32 -1.0, %v80_v35  ;;  %v164_v18 = vmul.f32 %v163_v32, %v103_v21  ;;  %vm166_vm12 = vcmp.lt.f32.partialorder %v165_v30, 0.0004427343 }
  0x70   :  { %v548_v6 = vsel %vm1255_vm8, %v532_v4, %v540_v59  ;;  %v485_v61 = vadd.f32 %v477_v43, %v469_v3  ;;  %v1301_v40 = vsel %vm190_vm11, %v626_v5, %v634_v20  ;;  %v533_v0 = vmul.f32 inf, %v806_v53 }
  0x71   :  { %v675_v27 = vpop.eup %674  ;;  %v556_v50 = vmul.f32 1.4142135, %v548_v6  ;;  %v334_v58 = vmul.f32 %v318_v48, %v1301_v40  ;;  %v96_v22 = vsub.f32 0.0, %v1295_v1  ;;  %v350_v21 = vsel %vm190_vm11, -3.5233877e-06, %v739_v49 }
  0x72   :  { %v501_v41 = vmul.f32 %v485_v61, %v1170_v17  ;;  %v161_v14 = vmul.f32 0.6931472, %v675_v27  ;;  %vm525_vm13 = vcmp.eq.f32.partialorder %v517_v26, 1.0  ;;  %v374_v31 = vsel %vm190_vm11, -4.3915065e-06, %v1453_v63 }
  0x73   :  { %v573_v45 = vmul.f32 %v1101_v57, %v556_v50  ;;  %v342_v4 = vadd.f32 %v334_v58, %v326_v51  ;;  %v104_v3 = vmul.f32 %v1295_v1, %v96_v22  ;;  %v398_v16 = vsel %vm190_vm11, 0.00021858087, %v741_v56 }
  0x74   :  { %v509_v39 = vadd.f32 %v501_v41, %v493_v8  ;;  %v167_v34 = vsel %vm166_vm12, %v164_v18, %v161_v14  ;;  %v422_v30 = vsel %vm190_vm11, -0.001253725, %v742_v15  ;;  %v446_v51 = vsel %vm190_vm11, -0.0041776816, %v743_v38 }
  0x75   :  { %v581_v54 = vadd.f32 %v573_v45, %v564_v23  ;;  %v358_v29 = vmul.f32 %v342_v4, %v1301_v40  ;;  %v1313_v28 = vsub.f32 0.0, %v167_v34  ;;  %v168_v24 = vadd.f32 1.0, %v104_v3 }
  0x76   :  { %v541_v17 = vmul.f32 %v806_v53, %v509_v39  ;;  %v171_v12 = vmul.f32 -0.5, %v104_v3  ;;  %v174_v5 = vand.u32 2147483647, %v104_v3  ;;  %v470_v22 = vsel %vm190_vm11, 0.24664073, %v744_v7 }
  0x77   :  { %589 = vst [vmem:[#allocation6 + $0x18] sm:$0xff] %v581_v54  ;;  %v366_v2 = vadd.f32 %v358_v29, %v350_v21  ;;  %676 = vrsqrt.f32 %v1313_v28  ;;  %vm280_vm15 = vcmp.eq.f32.partialorder %v1313_v28, inf  ;;  %v283_v58 = vand.u32 2147483648, %v1313_v28 }
  0x78   :  { %v549_v52 = vsel %vm525_vm13, %v533_v0, %v541_v17  ;;  %678 = vlog2.f32 %v168_v24  ;;  %v172_v53 = vadd.f32 1.0, %v171_v12  ;;  %vm175_vm14 = vcmp.lt.f32.partialorder %v174_v5, 0.0004427343  ;;  %v566_v5 = vld [vmem:[#allocation3 + $0x28] sm:$0xff] }
  0x79   :  { %v557_v60 = vmul.f32 1.4142135, %v549_v52  ;;  %v382_v33 = vmul.f32 %v366_v2, %v1301_v40  ;;  %vm282_vm0 = vcmp.eq.f32.partialorder %v1313_v28, 0.0  ;;  %vm191_vm1 = vcmp.lt.f32.partialorder %v1313_v28, 5.0 }
  0x7a   :  { %v173_v8 = vmul.f32 %v172_v53, %v104_v3  ;;  %v627_v14 = vadd.f32 -2.5, %v1313_v28  ;;  %v494_v3 = vsel %vm190_vm11, 1.5014094, %v745_v9  ;;  %v518_v21 = vand.u32 2147483647, %v808_v55 }
  0x7b   :  { %v574_v36 = vmul.f32 %v1101_v57, %v557_v60  ;;  %v390_v25 = vadd.f32 %v382_v33, %v374_v31  ;;  %v319_v54 = vsel %vm191_vm1, 2.8102264e-08, %v737_v44  ;;  %v327_v19 = vsel %vm191_vm1, 3.4327394e-07, %v738_v46 }
  0x7c   :  { %v534_v12 = vmul.f32 inf, %v808_v55  ;;  %vm526_vm2 = vcmp.eq.f32.partialorder %v518_v21, 1.0 }
  0x7d   :  { %v677_v32 = vpop.eup %676  ;;  %v582_v13 = vadd.f32 %v574_v36, %v565_v37  ;;  %v406_v11 = vmul.f32 %v390_v25, %v1301_v40 }
  0x7e   :  { %v274_v10 = vmul.f32 %v677_v32, %v1313_v28  ;;  %v679_v47 = vpop.eup %678 }
  0x7f   :  { %590 = vst [vmem:[#allocation6 + $0x20] sm:$0xff] %v582_v13  ;;  %v414_v42 = vadd.f32 %v406_v11, %v398_v16  ;;  %v170_v43 = vmul.f32 0.6931472, %v679_v47 }
  0x80   :  { %v275_v35 = vmul.f32 %v677_v32, %v274_v10  ;;  %v375_v10 = vsel %vm191_vm1, -4.3915065e-06, %v1453_v63 }
  0x81   :  { %v430_v59 = vmul.f32 %v414_v42, %v1301_v40  ;;  %v176_v26 = vsel %vm175_vm14, %v173_v8, %v170_v43  ;;  %v399_v43 = vsel %vm191_vm1, 0.00021858087, %v741_v56 }
  0x82   :  { %v276_v20 = vmul.f32 0.5, %v275_v35  ;;  %v1334_v61 = vsub.f32 0.0, %v176_v26 }
  0x83   :  { %v438_v48 = vadd.f32 %v430_v59, %v422_v30 }
  0x84   :  { %v277_v6 = vsub.f32 1.5, %v276_v20  ;;  %680 = vrsqrt.f32 %v1334_v61  ;;  %vm292_vm3 = vcmp.eq.f32.partialorder %v1334_v61, inf  ;;  %vm294_vm4 = vcmp.eq.f32.partialorder %v1334_v61, 0.0 }
  0x85   :  { %v454_v18 = vmul.f32 %v438_v48, %v1301_v40  ;;  %vm192_vm5 = vcmp.lt.f32.partialorder %v1334_v61, 5.0  ;;  %v628_v35 = vadd.f32 -2.5, %v1334_v61 }
  0x86   :  { %v278_v27 = vmul.f32 %v677_v32, %v277_v6 }
  0x87   :  { %v462_v50 = vadd.f32 %v454_v18, %v446_v51  ;;  %v320_v51 = vsel %vm192_vm5, 2.8102264e-08, %v737_v44  ;;  %v352_v44 = vsel %vm192_vm5, -3.5233877e-06, %v739_v49 }
  0x88   :  { %v279_v23 = vmul.f32 %v278_v27, %v1313_v28  ;;  %v328_v27 = vsel %vm192_vm5, 3.4327394e-07, %v738_v46 }
  0x89   :  { %v478_v41 = vmul.f32 %v462_v50, %v1301_v40  ;;  %v423_v50 = vsel %vm191_vm1, -0.001253725, %v742_v15 }
  0x8a   :  { %v281_v45 = vsel %vm280_vm15, %v1313_v28, %v279_v23  ;;  %v681_v0 = vpop.eup %680  ;;  %v448_v28 = vsel %vm192_vm5, -0.0041776816, %v743_v38 }
  0x8b   :  { %v486_v4 = vadd.f32 %v478_v41, %v470_v22  ;;  %v284_v39 = vsel %vm282_vm0, %v283_v58, %v281_v45  ;;  %v286_v17 = vmul.f32 %v681_v0, %v1334_v61 }
  0x8c   :  { %v635_v34 = vadd.f32 -3.0, %v284_v39  ;;  %v376_v39 = vsel %vm192_vm5, -4.3915065e-06, %v1453_v63 }
  0x8d   :  { %v502_v29 = vmul.f32 %v486_v4, %v1301_v40  ;;  %v287_v31 = vmul.f32 %v681_v0, %v286_v17  ;;  %v351_v40 = vsel %vm191_vm1, -3.5233877e-06, %v739_v49  ;;  %v495_v17 = vsel %vm191_vm1, 1.5014094, %v745_v9 }
  0x8e   :  { %v311_v24 = vsel %vm191_vm1, %v627_v14, %v635_v34  ;;  %v447_v14 = vsel %vm191_vm1, -0.0041776816, %v743_v38  ;;  %v520_v38 = vand.u32 2147483647, %v1295_v1 }
  0x8f   :  { %v510_v2 = vadd.f32 %v502_v29, %v494_v3  ;;  %v335_v52 = vmul.f32 %v319_v54, %v311_v24  ;;  %v288_v37 = vmul.f32 0.5, %v287_v31  ;;  %v400_v29 = vsel %vm192_vm5, 0.00021858087, %v741_v56 }
  0x90   :  { %v535_v31 = vmul.f32 inf, %v1246_v62  ;;  %vm528_vm7 = vcmp.eq.f32.partialorder %v520_v38, 1.0 }
  0x91   :  { %v542_v60 = vmul.f32 %v808_v55, %v510_v2  ;;  %v343_v33 = vadd.f32 %v335_v52, %v327_v19  ;;  %v289_v53 = vsub.f32 1.5, %v288_v37  ;;  %v295_v55 = vand.u32 2147483648, %v1334_v61 }
  0x92   :  { %v519_v19 = vand.u32 2147483647, %v1246_v62 }
  0x93   :  { %v550_v36 = vsel %vm526_vm2, %v534_v12, %v542_v60  ;;  %v359_v25 = vmul.f32 %v343_v33, %v311_v24  ;;  %v290_v13 = vmul.f32 %v681_v0, %v289_v53  ;;  %v471_v0 = vsel %vm191_vm1, 0.24664073, %v744_v7 }
  0x94   :  { %v558_v16 = vmul.f32 1.4142135, %v550_v36  ;;  %v424_v60 = vsel %vm192_vm5, -0.001253725, %v742_v15  ;;  %vm527_vm6 = vcmp.eq.f32.partialorder %v519_v19, 1.0 }
  0x95   :  { %v367_v32 = vadd.f32 %v359_v25, %v351_v40  ;;  %v291_v8 = vmul.f32 %v290_v13, %v1334_v61  ;;  %v567_v25 = vld [vmem:[#allocation3 + $0x30] sm:$0xff]  ;;  %v472_v15 = vsel %vm192_vm5, 0.24664073, %v744_v7  ;;  %v496_v13 = vsel %vm192_vm5, 1.5014094, %v745_v9  ;;  %v568_v7 = vld [vmem:[#allocation3 + $0x38] sm:$0xff] }
  0x96   :  { %v575_v11 = vmul.f32 %v1101_v57, %v558_v16 }
  0x97   :  { %v383_v42 = vmul.f32 %v367_v32, %v311_v24  ;;  %v293_v59 = vsel %vm292_vm3, %v1334_v61, %v291_v8 }
  0x98   :  { %v583_v47 = vadd.f32 %v575_v11, %v566_v5  ;;  %v296_v20 = vsel %vm294_vm4, %v295_v55, %v293_v59  ;;  %v536_v55 = vmul.f32 inf, %v1295_v1 }
  0x99   :  { %v391_v30 = vadd.f32 %v383_v42, %v375_v10  ;;  %v636_v26 = vadd.f32 -3.0, %v296_v20 }
  0x9a   :  { %591 = vst [vmem:[#allocation6 + $0x28] sm:$0xff] %v583_v47 }
  0x9b   :  { %v407_v48 = vmul.f32 %v391_v30, %v311_v24  ;;  %v312_v18 = vsel %vm192_vm5, %v628_v35, %v636_v26 }
  0x9c   :  { %v336_v58 = vmul.f32 %v320_v51, %v312_v18 }
  0x9d   :  { %v415_v6 = vadd.f32 %v407_v48, %v399_v43 }
  0x9e   :  { %v344_v23 = vadd.f32 %v336_v58, %v328_v27 }
  0x9f   :  { %v431_v22 = vmul.f32 %v415_v6, %v311_v24 }
  0xa0   :  { %v360_v45 = vmul.f32 %v344_v23, %v312_v18 }
  0xa1   :  { %v439_v41 = vadd.f32 %v431_v22, %v423_v50 }
  0xa2   :  { %v368_v3 = vadd.f32 %v360_v45, %v352_v44 }
  0xa3   :  { %v455_v4 = vmul.f32 %v439_v41, %v311_v24 }
  0xa4   :  { %v384_v21 = vmul.f32 %v368_v3, %v312_v18 }
  0xa5   :  { %v463_v46 = vadd.f32 %v455_v4, %v447_v14 }
  0xa6   :  { %v392_v54 = vadd.f32 %v384_v21, %v376_v39 }
  0xa7   :  { %v479_v34 = vmul.f32 %v463_v46, %v311_v24 }
  0xa8   :  { %v408_v2 = vmul.f32 %v392_v54, %v312_v18 }
  0xa9   :  { %v487_v49 = vadd.f32 %v479_v34, %v471_v0 }
  0xaa   :  { %v416_v12 = vadd.f32 %v408_v2, %v400_v29 }
  0xab   :  { %v503_v63 = vmul.f32 %v487_v49, %v311_v24 }
  0xac   :  { %v432_v33 = vmul.f32 %v416_v12, %v312_v18 }
  0xad   :  { %v511_v52 = vadd.f32 %v503_v63, %v495_v17 }
  0xae   :  { %v440_v37 = vadd.f32 %v432_v33, %v424_v60 }
  0xaf   :  { %v543_v56 = vmul.f32 %v1246_v62, %v511_v52 }
  0xb0   :  { %v456_v24 = vmul.f32 %v440_v37, %v312_v18 }
  0xb1   :  { %v551_v40 = vsel %vm527_vm6, %v535_v31, %v543_v56 }
  0xb2   :  { %v559_v36 = vmul.f32 1.4142135, %v551_v40  ;;  %v464_v16 = vadd.f32 %v456_v24, %v448_v28 }
  0xb4   :  { %v576_v53 = vmul.f32 %v1101_v57, %v559_v36  ;;  %v480_v32 = vmul.f32 %v464_v16, %v312_v18 }
  0xb6   :  { %v584_v5 = vadd.f32 %v576_v53, %v567_v25  ;;  %v488_v62 = vadd.f32 %v480_v32, %v472_v15 }
  0xb8   :  { %592 = vst [vmem:[#allocation6 + $0x30] sm:$0xff] %v584_v5  ;;  %v504_v11 = vmul.f32 %v488_v62, %v312_v18 }
  0xba   :  { %v512_v10 = vadd.f32 %v504_v11, %v496_v13 }
  0xbc   :  { %v544_v42 = vmul.f32 %v1295_v1, %v512_v10 }
  0xbe   :  { %v552_v8 = vsel %vm528_vm7, %v536_v55, %v544_v42 }
  0xbf   :  { %v560_v47 = vmul.f32 1.4142135, %v552_v8 }
  0xc1   :  { %v577_v9 = vmul.f32 %v1101_v57, %v560_v47 }
  0xc3   :  { %v585_v61 = vadd.f32 %v577_v9, %v568_v7 }
  0xc5   :  { %593 = vst [vmem:[#allocation6 + $0x38] sm:$0xff] %v585_v61 }
  0xc6   :  { %606 = dma.vmem_to_hbm [thread:$0]  %s599_s8, 1024, %s601_s11, [#allocation5], %s735_s17, %s735_s17, %s736_s18  }
  0xc7   :  { %732 = dma.done.wait [#allocation5], 1024  }
  0xc8   :  { %733 = vsyncadd [#allocation5], 4294966272 }
  0xc9   :  { %611 = vsyncpa [#allocation4], 1 }
  0xca   :  { %612 = vsyncpa [#allocation5], 1 }

</bundles_post_ra>
